<compile_context>
chip_gen: v6e
topology: v6e:2x2x1
jax: 0.10.0
libtpu: 0.0.40
codegen_flags: <defaults>
</compile_context>

<pallas_src>
import functools

import jax
import jax.numpy as jnp
from jax.experimental import pallas as pl
from jax.experimental.pallas import tpu as pltpu


# --------------------------------------------------------------------------
# Pallas kernels
# --------------------------------------------------------------------------

def _mm_kernel(*refs, relu, has_affine, has_res):
    """bf16 tiled matmul, f32 accumulation directly into the resident output
    block, fused per-output-channel scale/bias + residual-add + ReLU epilogue."""
    a_ref, b_ref = refs[0], refs[1]
    idx = 2
    if has_affine:
        s_ref, c_ref = refs[idx], refs[idx + 1]
        idx += 2
    if has_res:
        r_ref = refs[idx]
        idx += 1
    o_ref = refs[idx]

    k = pl.program_id(2)

    @pl.when(k == 0)
    def _():
        o_ref[...] = jnp.zeros_like(o_ref)

    o_ref[...] += jnp.dot(a_ref[...], b_ref[...],
                          preferred_element_type=jnp.float32)

    if has_affine or has_res or relu:
        @pl.when(k == pl.num_programs(2) - 1)
        def _():
            y = o_ref[...]
            if has_affine:
                y = y * s_ref[...] + c_ref[...]
            if has_res:
                y = y + r_ref[...]
            if relu:
                y = jnp.maximum(y, 0.0)
            o_ref[...] = y


def _maxpool3x3s2_kernel(x_ref, o_ref):
    """3x3 / stride-2 max pool from a parity-packed, -inf padded input.

    x_ref: (1, Hq, 2, Wq, 2C) where [., hq, a, wq, :C] = xp[., 2hq+a, 2wq, :]
    and [., hq, a, wq, C:] = xp[., 2hq+a, 2wq+1, :].  o_ref: (1, Ho, Wo, C).
    All slices below are static & unit-stride (no strided loads needed)."""
    _, Ho, Wo, C = o_ref.shape
    # Row taps 2ho, 2ho+1, 2ho+2 -> separable row max first.
    r0 = x_ref[0, 0:Ho, 0]          # (Ho, Wq, 2C)
    r1 = x_ref[0, 0:Ho, 1]
    r2 = x_ref[0, 1:Ho + 1, 0]
    m = jnp.maximum(jnp.maximum(r0, r1), r2)
    # Column taps 2wo, 2wo+1, 2wo+2 from the packed lane halves.
    a = m[:, 0:Wo, :C]
    b = m[:, 0:Wo, C:]
    c = m[:, 1:Wo + 1, :C]
    o_ref[0] = jnp.maximum(jnp.maximum(a, b), c)


def _instnorm_relu_kernel(x_ref, o_ref):
    """x_ref: (1, HW, C). InstanceNorm2d(affine=False, eps=1e-5) + ReLU,
    single-pass sum / sum-of-squares statistics (reduce over sublanes)."""
    x = x_ref[0]
    n = x.shape[0]
    s1 = jnp.sum(x, axis=0, keepdims=True)
    s2 = jnp.sum(x * x, axis=0, keepdims=True)
    mean = s1 * (1.0 / n)
    var = jnp.maximum(s2 * (1.0 / n) - mean * mean, 0.0)
    y = (x - mean) * jax.lax.rsqrt(var + 1e-5)
    o_ref[0] = jnp.maximum(y, 0.0)


# --------------------------------------------------------------------------
# Pallas wrappers
# --------------------------------------------------------------------------

def _rup(x, m):
    return ((x + m - 1) // m) * m


def _pick_tile(dim, cap, align):
    """Largest tile <= cap (multiple of `align`) that minimizes padding while
    not inflating the number of grid steps by more than 2 over the minimum."""
    cap = max(align, min(cap, _rup(dim, align)))
    max_steps = -(-dim // cap) + 2
    best_t, best_p = cap, _rup(dim, cap)
    t = cap - align
    while t >= align:
        p = _rup(dim, t)
        if -(-dim // t) <= max_steps and p < best_p:
            best_t, best_p = t, p
        t -= align
    return best_t


def matmul_fused(a, b, scale=None, bias=None, residual=None, *, relu=False):
    """out = act((a @ b) * scale + bias + residual); a/b are cast to bf16,
    accumulation is f32 on the MXU; scale/bias broadcast over rows."""
    M, K = a.shape
    _, N = b.shape

    tm = _pick_tile(M, 256, 16)      # bf16 sublane tile = 16
    tk = _pick_tile(K, 1024, 128)
    tn = _pick_tile(N, 256, 128)
    # If M fits a single tile, keep >=2 blocks on a parallel axis so v7x's
    # second TensorCore gets work (layer3 at small spatial sizes).
    if _rup(M, tm) == tm and N >= 256:
        tn = 128
    Mp, Kp, Np = _rup(M, tm), _rup(K, tk), _rup(N, tn)

    a_p = jnp.pad(a.astype(jnp.bfloat16), ((0, Mp - M), (0, Kp - K)))
    b_p = jnp.pad(b.astype(jnp.bfloat16), ((0, Kp - K), (0, Np - N)))

    has_affine = scale is not None
    has_res = residual is not None

    inputs = [a_p, b_p]
    in_specs = [pl.BlockSpec((tm, tk), lambda i, j, k: (i, k)),
                pl.BlockSpec((tk, tn), lambda i, j, k: (k, j))]
    if has_affine:
        s_p = jnp.pad(scale.reshape(1, -1).astype(jnp.float32),
                      ((0, 0), (0, Np - N)))
        c_p = jnp.pad(bias.reshape(1, -1).astype(jnp.float32),
                      ((0, 0), (0, Np - N)))
        inputs += [s_p, c_p]
        in_specs += [pl.BlockSpec((1, tn), lambda i, j, k: (0, j)),
                     pl.BlockSpec((1, tn), lambda i, j, k: (0, j))]
    if has_res:
        r_p = jnp.pad(residual.astype(jnp.float32),
                      ((0, Mp - M), (0, Np - N)))
        inputs.append(r_p)
        in_specs.append(pl.BlockSpec((tm, tn), lambda i, j, k: (i, j)))

    out = pl.pallas_call(
        functools.partial(_mm_kernel, relu=relu,
                          has_affine=has_affine, has_res=has_res),
        out_shape=jax.ShapeDtypeStruct((Mp, Np), jnp.float32),
        grid_spec=pltpu.PrefetchScalarGridSpec(
            num_scalar_prefetch=0,
            grid=(Mp // tm, Np // tn, Kp // tk),
            in_specs=in_specs,
            out_specs=pl.BlockSpec((tm, tn), lambda i, j, k: (i, j)),
        ),
        compiler_params=pltpu.CompilerParams(
            dimension_semantics=("parallel", "parallel", "arbitrary")),
    )(*inputs)
    return out[:M, :N]


@functools.partial(jax.jit, static_argnames=("stride", "pad", "relu"))
def conv2d(x, w, scale=None, bias=None, residual=None, *,
           stride=1, pad=0, relu=False):
    """NHWC conv via (1x1 fast path | bf16 im2col) + ONE fused Pallas matmul.
    w: (kh, kw, Cin, Cout).  scale/bias: folded eval-mode BN (or conv bias).
    residual (same shape as output) is fused into the matmul epilogue."""
    N, H, W, Cin = x.shape
    kh, kw, _, Cout = w.shape
    Ho = (H + 2 * pad - kh) // stride + 1
    Wo = (W + 2 * pad - kw) // stride + 1

    xb = x.astype(jnp.bfloat16)
    if kh == 1 and kw == 1 and pad == 0:
        # 1x1 conv is already a plain GEMM: no im2col staging at all.
        if stride != 1:
            xb = xb[:, ::stride, ::stride, :]
        patches = xb.reshape(N * Ho * Wo, Cin)
    else:
        # TODO(synk): implicit-GEMM (kernel taps on the K grid axis) would
        # avoid materializing the im2col copy; bf16 staging halves its cost.
        if pad > 0:
            xb = jnp.pad(xb, ((0, 0), (pad, pad), (pad, pad), (0, 0)))
        cols = []
        for ki in range(kh):
            for kj in range(kw):
                cols.append(xb[:, ki:ki + stride * (Ho - 1) + 1:stride,
                               kj:kj + stride * (Wo - 1) + 1:stride, :])
        patches = jnp.concatenate(cols, axis=-1).reshape(
            N * Ho * Wo, kh * kw * Cin)

    wmat = w.reshape(kh * kw * Cin, Cout).astype(jnp.bfloat16)
    res2 = None if residual is None else residual.reshape(N * Ho * Wo, Cout)
    out = matmul_fused(patches, wmat, scale, bias, res2, relu=relu)
    return out.reshape(N, Ho, Wo, Cout)


@jax.jit
def maxpool_3x3_s2_p1(x):
    """MaxPool2d(kernel_size=3, stride=2, padding=1), NHWC.  The padded map is
    parity-packed with a free reshape; the 3x3 window max is computed fully
    in-kernel, so no 9x-inflated copy is staged through HBM."""
    N, H, W, C = x.shape
    Ho = (H + 2 - 3) // 2 + 1
    Wo = (W + 2 - 3) // 2 + 1
    xp = jnp.pad(x, ((0, 0), (1, 1), (1, 1), (0, 0)),
                 constant_values=-jnp.inf)
    Hp, Wp = H + 2, W + 2
    if Hp % 2:
        xp = jnp.pad(xp, ((0, 0), (0, 1), (0, 0), (0, 0)),
                     constant_values=-jnp.inf)
        Hp += 1
    if Wp % 2:
        xp = jnp.pad(xp, ((0, 0), (0, 0), (0, 1), (0, 0)),
                     constant_values=-jnp.inf)
        Wp += 1
    Hq, Wq = Hp // 2, Wp // 2
    x5 = xp.reshape(N, Hq, 2, Wq, 2 * C)   # pure re-grouping, no data movement
    # TODO(synk): row-tile the per-sample block for production resolutions.
    return pl.pallas_call(
        _maxpool3x3s2_kernel,
        out_shape=jax.ShapeDtypeStruct((N, Ho, Wo, C), jnp.float32),
        grid=(N,),
        in_specs=[pl.BlockSpec((1, Hq, 2, Wq, 2 * C),
                               lambda n: (n, 0, 0, 0, 0))],
        out_specs=pl.BlockSpec((1, Ho, Wo, C), lambda n: (n, 0, 0, 0)),
        compiler_params=pltpu.CompilerParams(
            dimension_semantics=("parallel",)),
    )(x5)


@jax.jit
def instance_norm_relu(x):
    """nn.InstanceNorm2d(C) (affine=False, eps=1e-5) + ReLU, NHWC."""
    N, H, W, C = x.shape
    x3 = x.reshape(N, H * W, C)
    # TODO(synk): two-pass row-tiled reduction needed for very large H*W.
    out = pl.pallas_call(
        _instnorm_relu_kernel,
        out_shape=jax.ShapeDtypeStruct(x3.shape, jnp.float32),
        grid=(N,),
        in_specs=[pl.BlockSpec((1, H * W, C), lambda n: (n, 0, 0))],
        out_specs=pl.BlockSpec((1, H * W, C), lambda n: (n, 0, 0)),
        compiler_params=pltpu.CompilerParams(
            dimension_semantics=("parallel",)),
    )(x3)
    return out.reshape(N, H, W, C)


@jax.jit
def upsample2x_bilinear(x):
    """nn.Upsample(scale_factor=2, mode='bilinear', align_corners=False), NHWC."""
    # TODO(synk): gather-based bilinear interpolation kept in plain JAX (pure
    # data movement + tiny lerp); the heavy 3x3 conv consuming the result runs
    # in the Pallas matmul kernel.
    N, H, W, C = x.shape

    def idx_w(size):
        o = jnp.arange(2 * size, dtype=jnp.float32)
        src = jnp.maximum((o + 0.5) * 0.5 - 0.5, 0.0)
        i0 = jnp.clip(jnp.floor(src).astype(jnp.int32), 0, size - 1)
        i1 = jnp.clip(i0 + 1, 0, size - 1)
        w1 = src - i0.astype(jnp.float32)
        return i0, i1, w1

    hi0, hi1, hw = idx_w(H)
    wi0, wi1, ww = idx_w(W)
    xh = x[:, hi0] * (1.0 - hw)[None, :, None, None] + x[:, hi1] * hw[None, :, None, None]
    return (xh[:, :, wi0] * (1.0 - ww)[None, None, :, None]
            + xh[:, :, wi1] * ww[None, None, :, None])


# --------------------------------------------------------------------------
# Deterministic synthetic parameters (shapes from resnet101 / Encoder_res101)
# --------------------------------------------------------------------------

class _ParamGen:
    def __init__(self, seed=0):
        self.key = jax.random.PRNGKey(seed)
        self.n = 0

    def normal(self, shape, std):
        self.n += 1
        k = jax.random.fold_in(self.key, self.n)
        return jax.random.normal(k, shape, dtype=jnp.float32) * std

    def conv(self, kh, kw, cin, cout):
        std = (2.0 / (kh * kw * cin)) ** 0.5
        return self.normal((kh, kw, cin, cout), std)

    def bn(self, c):
        # Eval-mode BatchNorm folded into per-channel scale/bias.
        gamma = 1.0 + 0.1 * self.normal((c,), 1.0)
        beta = 0.1 * self.normal((c,), 1.0)
        run_mean = 0.1 * self.normal((c,), 1.0)
        run_var = 1.0 + 0.1 * jnp.abs(self.normal((c,), 1.0))
        scale = gamma / jnp.sqrt(run_var + 1e-5)
        bias = beta - run_mean * scale
        return (scale, bias)


def make_bottleneck_params(pg, inplanes, planes, stride):
    p = {
        "w1": pg.conv(1, 1, inplanes, planes), "bn1": pg.bn(planes),
        "w2": pg.conv(3, 3, planes, planes), "bn2": pg.bn(planes),
        "w3": pg.conv(1, 1, planes, planes * 4), "bn3": pg.bn(planes * 4),
        "stride": stride,
    }
    if stride != 1 or inplanes != planes * 4:
        p["wd"] = pg.conv(1, 1, inplanes, planes * 4)
        p["bnd"] = pg.bn(planes * 4)
    return p


def make_layer_params(pg, inplanes, planes, blocks, stride):
    ps = [make_bottleneck_params(pg, inplanes, planes, stride)]
    for _ in range(blocks - 1):
        ps.append(make_bottleneck_params(pg, planes * 4, planes, 1))
    return ps


def make_encoder_params(C, seed=0):
    pg = _ParamGen(seed)
    return {
        # backbone = resnet.children()[:-4] = conv1, bn1, relu, maxpool, layer1, layer2
        "conv1_w": pg.conv(7, 7, 3, 64), "bn1": pg.bn(64),
        "layer1": make_layer_params(pg, 64, 64, 3, 1),
        "layer2": make_layer_params(pg, 256, 128, 4, 2),
        "layer3": make_layer_params(pg, 512, 256, 23, 2),
        # UpsamplingConcat(1536, 512): two 3x3 convs, no bias, InstanceNorm+ReLU
        "uc_w1": pg.conv(3, 3, 1536, 512),
        "uc_w2": pg.conv(3, 3, 512, 512),
        # depth_layer: 1x1 conv 512 -> C, with bias
        "depth_w": pg.conv(1, 1, 512, C),
        "depth_b": pg.normal((C,), 0.01),
    }


# --------------------------------------------------------------------------
# Forward pass
# --------------------------------------------------------------------------

def bottleneck_forward(x, p):
    s = p["stride"]
    out = conv2d(x, p["w1"], *p["bn1"], stride=1, pad=0, relu=True)
    out = conv2d(out, p["w2"], *p["bn2"], stride=s, pad=1, relu=True)
    if "wd" in p:
        identity = conv2d(x, p["wd"], *p["bnd"], stride=s, pad=0, relu=False)
    else:
        identity = x
    # Residual add + ReLU fused into the final 1x1 conv's matmul epilogue.
    return conv2d(out, p["w3"], *p["bn3"], residual=identity,
                  stride=1, pad=0, relu=True)


def encoder_res101_forward(params, x_nchw):
    x = jnp.transpose(x_nchw, (0, 2, 3, 1)).astype(jnp.float32)  # NCHW -> NHWC

    # backbone (conv1, bn1, relu, maxpool, layer1, layer2)
    x = conv2d(x, params["conv1_w"], *params["bn1"], stride=2, pad=3, relu=True)
    x = maxpool_3x3_s2_p1(x)
    for p in params["layer1"]:
        x = bottleneck_forward(x, p)
    for p in params["layer2"]:
        x = bottleneck_forward(x, p)
    x1 = x                                  # (N, H/8, W/8, 512)

    for p in params["layer3"]:
        x = bottleneck_forward(x, p)
    x2 = x                                  # (N, H/16, W/16, 1024)

    # UpsamplingConcat(1536, 512): upsample x2, cat([x1, up(x2)]), conv/IN/ReLU x2
    xu = upsample2x_bilinear(x2)
    xc = jnp.concatenate([x1, xu], axis=-1)                 # channels = 512 + 1024
    y = conv2d(xc, params["uc_w1"], stride=1, pad=1, relu=False)
    y = instance_norm_relu(y)
    y = conv2d(y, params["uc_w2"], stride=1, pad=1, relu=False)
    y = instance_norm_relu(y)

    # depth_layer: 1x1 conv with bias
    C = params["depth_w"].shape[-1]
    y = conv2d(y, params["depth_w"], jnp.ones((C,), jnp.float32),
               params["depth_b"], stride=1, pad=0, relu=False)
    return jnp.transpose(y, (0, 3, 1, 2))                   # NHWC -> NCHW


# --------------------------------------------------------------------------

if __name__ == "__main__":
    C = 64
    params = make_encoder_params(C, seed=0)

    key = jax.random.PRNGKey(0)
    x = jax.random.normal(key, (2, 3, 64, 64), dtype=jnp.float32)  # NCHW input

    out = encoder_res101_forward(params, x)
    out = jax.block_until_ready(out)

    assert out.shape == (2, C, 8, 8), out.shape        # (N, C, H/8, W/8)
    assert bool(jnp.all(jnp.isfinite(out)))
    print("KERNEL_OK")
</pallas_src>

<mosaic_0001>
module attributes {stable_mosaic.version = 11 : i64} {
  func.func @_mm_kernel(%arg0: i32, %arg1: i32, %arg2: i32, %arg3: memref<256x256xbf16, #tpu.memory_space<vmem>>, %arg4: memref<256x128xbf16, #tpu.memory_space<vmem>>, %arg5: memref<1x128xf32, #tpu.memory_space<vmem>>, %arg6: memref<1x128xf32, #tpu.memory_space<vmem>>, %arg7: memref<256x128xf32, #tpu.memory_space<vmem>>) attributes {dimension_semantics = [#tpu.dimension_semantics<parallel>, #tpu.dimension_semantics<parallel>, #tpu.dimension_semantics<arbitrary>], iteration_bounds = array<i64: 8, 1, 1>, scalar_prefetch = 0 : i64, scratch_operands = 0 : i64, tpu.core_type = #tpu.core_type<tc>, window_params = [{transform_indices = @transform_0, window_bounds = array<i64: 256, 256>}, {transform_indices = @transform_1, window_bounds = array<i64: 256, 128>}, {transform_indices = @transform_2, window_bounds = array<i64: 1, 128>}, {transform_indices = @transform_3, window_bounds = array<i64: 1, 128>}, {transform_indices = @transform_4, window_bounds = array<i64: 256, 128>}]} {
    %c0_i32 = arith.constant 0 : i32
    %0 = arith.cmpi eq, %arg2, %c0_i32 : i32
    %1 = arith.extui %0 : i1 to i32
    %c0_i32_0 = arith.constant 0 : i32
    %2 = arith.cmpi ne, %1, %c0_i32_0 : i32
    scf.if %2 {
      %cst_10 = arith.constant 0.000000e+00 : f32
      %12 = vector.broadcast %cst_10 : f32 to vector<256x128xf32>
      %c0_11 = arith.constant 0 : index
      %c0_12 = arith.constant 0 : index
      %13 = vector.load %arg7[%c0_11, %c0_12] : memref<256x128xf32, #tpu.memory_space<vmem>>, vector<256x128xf32>
      tpu.vector_store %arg7[%c0_11, %c0_12], %12 {strides = array<i32>} : memref<256x128xf32, #tpu.memory_space<vmem>>, vector<256x128xf32>,
    } else {
    }
    %c0 = arith.constant 0 : index
    %c0_1 = arith.constant 0 : index
    %3 = vector.load %arg7[%c0, %c0_1] : memref<256x128xf32, #tpu.memory_space<vmem>>, vector<256x128xf32>
    %c0_2 = arith.constant 0 : index
    %c0_3 = arith.constant 0 : index
    %4 = vector.load %arg3[%c0_2, %c0_3] : memref<256x256xbf16, #tpu.memory_space<vmem>>, vector<256x256xbf16>
    %c0_4 = arith.constant 0 : index
    %c0_5 = arith.constant 0 : index
    %5 = vector.load %arg4[%c0_4, %c0_5] : memref<256x128xbf16, #tpu.memory_space<vmem>>, vector<256x128xbf16>
    %cst = arith.constant dense<0.000000e+00> : vector<256x128xf32>
    %6 = tpu.matmul %4, %5, %cst {dimension_numbers = #tpu.dot_dimension_numbers<[1], [0], [0], [1], [0, 0, 1, 1], [], []>} : vector<256x256xbf16>, vector<256x128xbf16>, vector<256x128xf32> -> vector<256x128xf32>
    %7 = arith.addf %3, %6 : vector<256x128xf32>
    %c0_6 = arith.constant 0 : index
    %c0_7 = arith.constant 0 : index
    %8 = vector.load %arg7[%c0_6, %c0_7] : memref<256x128xf32, #tpu.memory_space<vmem>>, vector<256x128xf32>
    tpu.vector_store %arg7[%c0_6, %c0_7], %7 {strides = array<i32>} : memref<256x128xf32, #tpu.memory_space<vmem>>, vector<256x128xf32>,
    %c0_i32_8 = arith.constant 0 : i32
    %9 = arith.cmpi eq, %arg2, %c0_i32_8 : i32
    %10 = arith.extui %9 : i1 to i32
    %c0_i32_9 = arith.constant 0 : i32
    %11 = arith.cmpi ne, %10, %c0_i32_9 : i32
    scf.if %11 {
      %c0_10 = arith.constant 0 : index
      %c0_11 = arith.constant 0 : index
      %12 = vector.load %arg7[%c0_10, %c0_11] : memref<256x128xf32, #tpu.memory_space<vmem>>, vector<256x128xf32>
      %c0_12 = arith.constant 0 : index
      %c0_13 = arith.constant 0 : index
      %13 = vector.load %arg5[%c0_12, %c0_13] : memref<1x128xf32, #tpu.memory_space<vmem>>, vector<1x128xf32>
      %14 = vector.broadcast %13 : vector<1x128xf32> to vector<256x128xf32>
      %15 = arith.mulf %12, %14 : vector<256x128xf32>
      %c0_14 = arith.constant 0 : index
      %c0_15 = arith.constant 0 : index
      %16 = vector.load %arg6[%c0_14, %c0_15] : memref<1x128xf32, #tpu.memory_space<vmem>>, vector<1x128xf32>
      %17 = vector.broadcast %16 : vector<1x128xf32> to vector<256x128xf32>
      %18 = arith.addf %15, %17 : vector<256x128xf32>
      %cst_16 = arith.constant 0.000000e+00 : f32
      %19 = vector.broadcast %cst_16 : f32 to vector<256x128xf32>
      %20 = arith.maximumf %18, %19 : vector<256x128xf32>
      %c0_17 = arith.constant 0 : index
      %c0_18 = arith.constant 0 : index
      %21 = vector.load %arg7[%c0_17, %c0_18] : memref<256x128xf32, #tpu.memory_space<vmem>>, vector<256x128xf32>
      tpu.vector_store %arg7[%c0_17, %c0_18], %20 {strides = array<i32>} : memref<256x128xf32, #tpu.memory_space<vmem>>, vector<256x128xf32>,
    } else {
    }
    return
  }
  func.func @transform_0(%arg0: i32, %arg1: i32, %arg2: i32) -> (i32, i32) {
    %c0_i32 = arith.constant 0 : i32
    return %arg0, %arg2 : i32, i32
  }
  func.func @transform_1(%arg0: i32, %arg1: i32, %arg2: i32) -> (i32, i32) {
    %c0_i32 = arith.constant 0 : i32
    return %arg2, %arg1 : i32, i32
  }
  func.func @transform_2(%arg0: i32, %arg1: i32, %arg2: i32) -> (i32, i32) {
    %c0_i32 = arith.constant 0 : i32
    %c0_i32_0 = arith.constant 0 : i32
    return %c0_i32, %arg1 : i32, i32
  }
  func.func @transform_3(%arg0: i32, %arg1: i32, %arg2: i32) -> (i32, i32) {
    %c0_i32 = arith.constant 0 : i32
    %c0_i32_0 = arith.constant 0 : i32
    return %c0_i32, %arg1 : i32, i32
  }
  func.func @transform_4(%arg0: i32, %arg1: i32, %arg2: i32) -> (i32, i32) {
    %c0_i32 = arith.constant 0 : i32
    return %arg0, %arg1 : i32, i32
  }
}

</mosaic_0001>

<bundles_post_ra>
// kernel: conv2d.1
= control target key start
LH: loop header
LB: loop body
LE: loop exit
PB: predicated region body
PF: predicated region fallthrough
CT: control target
= control target key end

     0   :  { %9 = vsyncpa [#allocation3], 0  ;;  %s1962_s0 = inlined_call_operand.vmem [shape: bf16[2048,256], index: 0, kind: input, shape index: {}]   ;;  %s1963_s1 = inlined_call_operand.vmem [shape: bf16[256,128], index: 1, kind: input, shape index: {}]   ;;  %s1964_s2 = inlined_call_operand.vmem [shape: f32[1,128], index: 2, kind: input, shape index: {}]   ;;  %s1965_s3 = inlined_call_operand.vmem [shape: f32[1,128], index: 3, kind: input, shape index: {}]   ;;  %s1966_s4 = inlined_call_operand.hbm [shape: f32[2048,128], index: 4, kind: output, shape index: {}]  }
   0x1   :  { %11 = vsyncpa [#allocation3 + $0x1], 0  ;;  %s1654_s15 = smov 0   ;;  %s1656_s16 = smov 0  }
   0x2   :  { %s1658_s17 = smov 0   ;;  %s1660_s18 = smov 0  }
   0x3   :  { %s1662_s19 = smov 0   ;;  %s1664_s20 = smov 0  }
   0x4 LB: > { %s1229_s21 = sadd.s32 4294967295, %s1624_s20   ;;  %s1230_s22 = sadd.s32 4294967294, %s1624_s20   ;;  %s1624_s20 = sphi %s1664_s20, %s17_s20   ;;  %s1620_s19 = sphi %s1662_s19, %s1973_s19   ;;  %s1616_s18 = sphi %s1660_s18, %s1972_s18   ;;  %s1612_s17 = sphi %s1658_s17, %s1971_s17   ;;  %s1608_s16 = sphi %s1656_s16, %s1970_s16   ;;  %s1604_s15 = sphi %s1654_s15, %s1969_s15  }
   0x5   : > { %s36_s23 = sadd.s32 1, %s1620_s19  ;;  %s153_s24 = sadd.s32 1, %s1612_s17 }
   0x6   : > { %p38_p0 = scmp.ge.s32.totalorder %s36_s23, 8  ;;  %p163_p1 = scmp.ne.s32.totalorder %s1612_s17, %s1608_s16 }
   0x7   : > { %p164_p2 = scmp.eq.s32.totalorder %s1229_s21, 7  ;;  %p169_p3 = scmp.ne.s32.totalorder %s1608_s16, %s1604_s15 }
   0x8   : > { %s1975_s23 = smov (%p38_p0, %s36_s23), 0  ;;  %p170_p5 = scmp.eq.s32.totalorder %s1230_s22, 7 }
   0x9   : > { %p1694_p4 = por %p164_p2, %p163_p1  ;;  %s148_s26 = ssub.s32 %s1620_s19, %s1975_s23 }
   0xa   : > { %p1236_p6 = scmp.ge.s32.totalorder %s1624_s20, 1  ;;  %p151_p7 = scmp.eq.s32.totalorder %s148_s26, 0 }
   0xb   : > { %p1701_p8 = por %p170_p5, %p169_p3  ;;  %p227_p9 = scmp.lt.s32.totalorder %s1624_s20, 9 }
   0xc   : > { %s1707_s28 = scalar_select %p151_p7, %s1612_s17, %s153_s24  }
   0xd   : > { %p228_p10 = pnand %p1236_p6, %p227_p9 }
   0xe   : > { %s1238_s5 = sshll.u32 (!%p228_p10), %s1616_s18, 5  ;;  %s269_s9 = sand.u32 (!%p228_p10), 1, %s1608_s16  }
   0xf   : > { %231 = sbr.rel (%p228_p10) target bundleno = 330 (0x14a), region = 36  ;;  %p274_p11 = scmp.lt.s32.totalorder (!%p228_p10), %s1238_s5, 255 }
  0x10   : > { %s1297_s21 = sshll.u32 (!%p228_p10), %s1616_s18, 12  ;;  %s1917_s18 = scalar_lea.sflag (!%p228_p10), [#allocation3], %s269_s9 }
  0x11   : > { %s1909_s29 = scalar_lea.hbm (!%p228_p10), %s1966_s4, %s1297_s21  ;;  %s1626_s6 = smov (!%p228_p10), [#allocation2]  }
  0x12   : > { %s1552_s7 = sshll.u32 (!%p228_p10), %s1626_s6, 4  ;;  %s1553_s7 = int_to_ptr.vmem [resolvable:$false] %s1552_s7 }
  0x13   : > { %s1554_s8 = scalar_lea.vmem (!%p228_p10), %s1553_s7, 8192 }
  0x14   : > { %v1484_v0 = vld [vmem:[%s1963_s1 + $0x78] sm:$0xff]   ;;  %v1486_v2 = vld [vmem:[%s1963_s1 + $0x70] sm:$0xff]   ;;  %v1488_v4 = vld [vmem:[%s1963_s1 + $0x68] sm:$0xff]   ;;  %s1977_s5 = smov (!%p274_p11, %s1238_s5), 255 }
  0x15   : > { %v1485_v1 = vld [vmem:[%s1963_s1 + $0x38] sm:$0xff]   ;;  %1298 = vmatprep.subr.bf16.mxu0 %v1484_v0  ;;  %1410 = vmatprep.subr.bf16.mxu1 %v1484_v0  ;;  %v1487_v3 = vld [vmem:[%s1963_s1 + $0x30] sm:$0xff]   ;;  %v1489_v5 = vld [vmem:[%s1963_s1 + $0x28] sm:$0xff]   ;;  %s1296_s30 = sshll.u32 %s1977_s5, 3 }
  0x16   : > { %1299 = vmatpush3.bf16.msra.mxu0 %v1485_v1  ;;  %1418 = vmatpush3.bf16.msra.mxu1 %v1485_v1  ;;  %v1490_v6 = vld [vmem:[%s1963_s1 + $0x60] sm:$0xff]   ;;  %v1492_v8 = vld [vmem:[%s1963_s1 + $0x58] sm:$0xff]   ;;  %s1740_s10 = scalar_lea.vmem %s1962_s0, %s1296_s30  ;;  %v1494_v10 = vld [vmem:[%s1963_s1 + $0x50] sm:$0xff]  }
  0x17   : > { %1300 = vmatprep.subr.bf16.mxu0 %v1486_v2  ;;  %1411 = vmatprep.subr.bf16.mxu1 %v1486_v2  ;;  %v1491_v7 = vld [vmem:[%s1963_s1 + $0x20] sm:$0xff]   ;;  %v1493_v9 = vld [vmem:[%s1963_s1 + $0x18] sm:$0xff]   ;;  %v1495_v13 = vld [vmem:[%s1963_s1 + $0x10] sm:$0xff]  }
  0x18   : > { %v1502_v11 = vld [vmem:[%s1740_s10 + $0x4] ss:$8 sps:$4 sm:$0xff]   ;;  %v1500_v18 = vld [vmem:[%s1740_s10] ss:$8 sps:$4 sm:$0xff]   ;;  %v1506_v20 = vld [vmem:[%s1740_s10 + $0x14] ss:$8 sps:$4 sm:$0xff]  }
  0x19   : > { %v1505_v12 = vld [vmem:[%s1740_s10 + $0x84] ss:$8 sps:$4 sm:$0xff]   ;;  %721 = vmatprep.mubr.bf16.mxu0 %v1502_v11  ;;  %v1503_v19 = vld [vmem:[%s1740_s10 + $0x80] ss:$8 sps:$4 sm:$0xff]   ;;  %v1508_v21 = vld [vmem:[%s1740_s10 + $0x94] ss:$8 sps:$4 sm:$0xff]  }
  0x1a   : > { %1301 = vmatpush3.bf16.msra.mxu0 %v1487_v3  ;;  %1419 = vmatpush3.bf16.msra.mxu1 %v1487_v3  ;;  %v1496_v14 = vld [vmem:[%s1963_s1 + $0x48] sm:$0xff]   ;;  %v1498_v16 = vld [vmem:[%s1963_s1 + $0x40] sm:$0xff]   ;;  %v1510_v22 = vld [vmem:[%s1740_s10 + $0x10] ss:$8 sps:$4 sm:$0xff]  }
  0x1b   : > { %1302 = vmatprep.subr.bf16.mxu0 %v1488_v4  ;;  %1412 = vmatprep.subr.bf16.mxu1 %v1488_v4  ;;  %v1497_v15 = vld [vmem:[%s1963_s1 + $0x8] sm:$0xff]   ;;  %v1499_v17 = vld [vmem:[%s1963_s1] sm:$0xff]   ;;  %v1511_v23 = vld [vmem:[%s1740_s10 + $0x90] ss:$8 sps:$4 sm:$0xff]  }
  0x1c   : > { %785 = vmatprep.mubr.bf16.mxu1 %v1505_v12  ;;  %v1512_v24 = vld [vmem:[%s1740_s10 + $0x24] ss:$8 sps:$4 sm:$0xff]   ;;  %v1516_v26 = vld [vmem:[%s1740_s10 + $0x20] ss:$8 sps:$4 sm:$0xff]   ;;  %v1518_v28 = vld [vmem:[%s1740_s10 + $0x34] ss:$8 sps:$4 sm:$0xff]  }
  0x1d   : > { %v1514_v25 = vld [vmem:[%s1740_s10 + $0xa4] ss:$8 sps:$4 sm:$0xff]   ;;  %v1517_v27 = vld [vmem:[%s1740_s10 + $0xa0] ss:$8 sps:$4 sm:$0xff]   ;;  %v1520_v29 = vld [vmem:[%s1740_s10 + $0xb4] ss:$8 sps:$4 sm:$0xff]  }
  0x1e   : > { %1303 = vmatpush3.bf16.msra.mxu0 %v1489_v5  ;;  %1420 = vmatpush3.bf16.msra.mxu1 %v1489_v5  ;;  %v1522_v30 = vld [vmem:[%s1740_s10 + $0x30] ss:$8 sps:$4 sm:$0xff]   ;;  %v1524_v32 = vld [vmem:[%s1740_s10 + $0x44] ss:$8 sps:$4 sm:$0xff]   ;;  %v1528_v34 = vld [vmem:[%s1740_s10 + $0x40] ss:$8 sps:$4 sm:$0xff]  }
  0x1f   : > { %1304 = vmatprep.subr.bf16.mxu0 %v1490_v6  ;;  %1413 = vmatprep.subr.bf16.mxu1 %v1490_v6  ;;  %v1523_v31 = vld [vmem:[%s1740_s10 + $0xb0] ss:$8 sps:$4 sm:$0xff]   ;;  %v1526_v33 = vld [vmem:[%s1740_s10 + $0xc4] ss:$8 sps:$4 sm:$0xff]   ;;  %v1529_v35 = vld [vmem:[%s1740_s10 + $0xc0] ss:$8 sps:$4 sm:$0xff]  }
  0x20   : > { %v1530_v36 = vld [vmem:[%s1740_s10 + $0x54] ss:$8 sps:$4 sm:$0xff]   ;;  %v1534_v38 = vld [vmem:[%s1740_s10 + $0x50] ss:$8 sps:$4 sm:$0xff]   ;;  %v1536_v40 = vld [vmem:[%s1740_s10 + $0x64] ss:$8 sps:$4 sm:$0xff]  }
  0x21   : > { %v1532_v37 = vld [vmem:[%s1740_s10 + $0xd4] ss:$8 sps:$4 sm:$0xff]   ;;  %v1535_v39 = vld [vmem:[%s1740_s10 + $0xd0] ss:$8 sps:$4 sm:$0xff]   ;;  %v1538_v41 = vld [vmem:[%s1740_s10 + $0xe4] ss:$8 sps:$4 sm:$0xff]  }
  0x22   : > { %1305 = vmatpush3.bf16.msra.mxu0 %v1491_v7  ;;  %1421 = vmatpush3.bf16.msra.mxu1 %v1491_v7  ;;  %v1540_v42 = vld [vmem:[%s1740_s10 + $0x60] ss:$8 sps:$4 sm:$0xff]   ;;  %v1542_v44 = vld [vmem:[%s1740_s10 + $0x74] ss:$8 sps:$4 sm:$0xff]   ;;  %v1546_v46 = vld [vmem:[%s1740_s10 + $0x70] ss:$8 sps:$4 sm:$0xff]  }
  0x23   : > { %1306 = vmatprep.subr.bf16.mxu0 %v1492_v8  ;;  %1414 = vmatprep.subr.bf16.mxu1 %v1492_v8  ;;  %v1541_v43 = vld [vmem:[%s1740_s10 + $0xe0] ss:$8 sps:$4 sm:$0xff]   ;;  %v1544_v45 = vld [vmem:[%s1740_s10 + $0xf4] ss:$8 sps:$4 sm:$0xff]   ;;  %v1547_v47 = vld [vmem:[%s1740_s10 + $0xf0] ss:$8 sps:$4 sm:$0xff]  }
  0x24   : > { %v1799_v54 = vld [vmem:[%s1964_s2] ss:$0 sm:$0xff]  ;;  %s1237_s10 = sshll.u32 %s269_s9, 8 }
  0x25   : > { %v1804_v57 = vld [vmem:[%s1965_s3] ss:$0 sm:$0xff]  ;;  %s1814_s14 = scalar_lea.vmem [#allocation2], %s1237_s10 }
  0x26   : > { %1307 = vmatpush3.bf16.msra.mxu0 %v1493_v9  ;;  %1422 = vmatpush3.bf16.msra.mxu1 %v1493_v9  ;;  %s1106_s22 = sshll.u32 %s1814_s14, 4  ;;  %s1911_s22 = int_to_ptr.vmem [resolvable:$true] %s1106_s22 }
  0x27   : > { %1308 = vmatprep.subr.bf16.mxu0 %v1494_v10  ;;  %1415 = vmatprep.subr.bf16.mxu1 %v1494_v10  ;;  %s1548_s30 = scalar_lea.vmem %s1911_s22, 4096  ;;  %p1555_p1 = scmp.lt.s32.totalorder %s1911_s22, %s1553_s7 }
  0x28   : > { %p1549_p12 = scmp.ne.s32.totalorder %s1911_s22, %s1548_s30  ;;  %p1556_p2 = scmp.lt.s32.totalorder %s1554_s8, %s1548_s30 }
  0x2a   : > { %1309 = vmatpush3.bf16.msra.mxu0 %v1495_v13  ;;  %1423 = vmatpush3.bf16.msra.mxu1 %v1495_v13  ;;  %p1550_p13 = pnand %p1549_p12, %p1694_p4  ;;  %p1557_p3 = por %p1556_p2, %p1555_p1 }
  0x2b   : > { %1310 = vmatprep.subr.bf16.mxu0 %v1496_v14  ;;  %1416 = vmatprep.subr.bf16.mxu1 %v1496_v14 }
  0x2c   : > { %p1551_p0 = pneg %p1550_p13 }
  0x2e   : > { %1311 = vmatpush3.bf16.msra.mxu0 %v1497_v15  ;;  %1424 = vmatpush3.bf16.msra.mxu1 %v1497_v15  ;;  %p1558_p5 = pnand %p1557_p3, %p1551_p0 }
  0x2f   : > { %1312 = vmatprep.subr.bf16.mxu0 %v1498_v16  ;;  %1417 = vmatprep.subr.bf16.mxu1 %v1498_v16 }
  0x32   : > { %1313 = vmatpush3.bf16.msra.mxu0 %v1499_v17  ;;  %1425 = vmatpush3.bf16.msra.mxu1 %v1499_v17 }
  0x35   : > { %722 = vmatmul.mubr.bf16.vlgmr.msra.gmra.mxu0 %v1500_v18  ;;  %786 = vmatmul.mubr.bf16.vlgmr.msra.gmra.mxu1 %v1503_v19 }
  0x36   : > { %729 = vmatprep.mubr.bf16.mxu0 %v1506_v20  ;;  %793 = vmatprep.mubr.bf16.mxu1 %v1508_v21 }
  0x3d   : > { %730 = vmatmul.mubr.bf16.gmra.mxu0 %v1510_v22  ;;  %794 = vmatmul.mubr.bf16.gmra.mxu1 %v1511_v23 }
  0x3e   : > { %737 = vmatprep.mubr.bf16.mxu0 %v1512_v24  ;;  %801 = vmatprep.mubr.bf16.mxu1 %v1514_v25 }
  0x45   : > { %738 = vmatmul.mubr.bf16.gmra.mxu0 %v1516_v26  ;;  %802 = vmatmul.mubr.bf16.gmra.mxu1 %v1517_v27 }
  0x46   : > { %745 = vmatprep.mubr.bf16.mxu0 %v1518_v28  ;;  %809 = vmatprep.mubr.bf16.mxu1 %v1520_v29 }
  0x4d   : > { %746 = vmatmul.mubr.bf16.gmra.mxu0 %v1522_v30  ;;  %810 = vmatmul.mubr.bf16.gmra.mxu1 %v1523_v31 }
  0x4e   : > { %753 = vmatprep.mubr.bf16.mxu0 %v1524_v32  ;;  %817 = vmatprep.mubr.bf16.mxu1 %v1526_v33 }
  0x55   : > { %754 = vmatmul.mubr.bf16.gmra.mxu0 %v1528_v34  ;;  %818 = vmatmul.mubr.bf16.gmra.mxu1 %v1529_v35 }
  0x56   : > { %761 = vmatprep.mubr.bf16.mxu0 %v1530_v36  ;;  %825 = vmatprep.mubr.bf16.mxu1 %v1532_v37 }
  0x5d   : > { %762 = vmatmul.mubr.bf16.gmra.mxu0 %v1534_v38  ;;  %826 = vmatmul.mubr.bf16.gmra.mxu1 %v1535_v39 }
  0x5e   : > { %769 = vmatprep.mubr.bf16.mxu0 %v1536_v40  ;;  %833 = vmatprep.mubr.bf16.mxu1 %v1538_v41 }
  0x65   : > { %770 = vmatmul.mubr.bf16.gmra.mxu0 %v1540_v42  ;;  %834 = vmatmul.mubr.bf16.gmra.mxu1 %v1541_v43 }
  0x66   : > { %777 = vmatprep.mubr.bf16.mxu0 %v1542_v44  ;;  %841 = vmatprep.mubr.bf16.mxu1 %v1544_v45 }
  0x6d   : > { %778 = vmatmul.mubr.bf16.gmra.mxu0 %v1546_v46  ;;  %842 = vmatmul.mubr.bf16.gmra.mxu1 %v1547_v47 }
  0xf5   : > { %v1314_v48 = vpop.f32.mrf.mxu0  ;;  %v1362_v49 = vpop.f32.mrf.mxu1 }
  0xf7   : > { %v1315_v50 = vpop.f32.mrf.mxu0  ;;  %v1363_v51 = vpop.f32.mrf.mxu1 }
  0xf8   : > { %v1316_v52 = vadd.f32 %v1315_v50, %v1314_v48  ;;  %v1364_v53 = vadd.f32 %v1363_v51, %v1362_v49 }
  0xf9   : > { %v1317_v55 = vpop.f32.mrf.mxu0  ;;  %v1365_v56 = vpop.f32.mrf.mxu1 }
  0xfa   : > { %v956_v60 = vmul.f32 %v1316_v52, %v1799_v54  ;;  %v972_v61 = vmul.f32 %v1364_v53, %v1799_v54 }
  0xfb   : > { %v1318_v58 = vpop.f32.mrf.mxu0  ;;  %v1366_v59 = vpop.f32.mrf.mxu1 }
  0xfc   : > { %v1319_v62 = vadd.f32 %v1318_v58, %v1317_v55  ;;  %v1367_v63 = vadd.f32 %v1366_v59, %v1365_v56  ;;  %v995_v2 = vadd.f32 %v1804_v57, %v956_v60  ;;  %v1011_v3 = vadd.f32 %v1804_v57, %v972_v61 }
  0xfd   : > { %v1320_v0 = vpop.f32.mrf.mxu0  ;;  %v1368_v1 = vpop.f32.mrf.mxu1 }
  0xfe   : > { %v1027_v6 = vmax.f32 %v995_v2, 0.0  ;;  %v1043_v7 = vmax.f32 %v1011_v3, 0.0  ;;  %v957_v8 = vmul.f32 %v1319_v62, %v1799_v54  ;;  %v973_v9 = vmul.f32 %v1367_v63, %v1799_v54 }
  0xff   : > { %v1321_v4 = vpop.f32.mrf.mxu0  ;;  %v1369_v5 = vpop.f32.mrf.mxu1 }
 0x100   : > { %v1322_v10 = vadd.f32 %v1321_v4, %v1320_v0  ;;  %v1370_v11 = vadd.f32 %v1369_v5, %v1368_v1  ;;  %1059 = vst [vmem:[%s1814_s14] sm:$0xff] %v1027_v6  ;;  %1075 = vst [vmem:[%s1814_s14 + $0x80] sm:$0xff] %v1043_v7  ;;  %v996_v14 = vadd.f32 %v1804_v57, %v957_v8 }
 0x101   : > { %v1323_v12 = vpop.f32.mrf.mxu0  ;;  %v1371_v13 = vpop.f32.mrf.mxu1  ;;  %v1012_v15 = vadd.f32 %v1804_v57, %v973_v9 }
 0x102   : > { %v1028_v18 = vmax.f32 %v996_v14, 0.0  ;;  %v958_v22 = vmul.f32 %v1322_v10, %v1799_v54  ;;  %v974_v23 = vmul.f32 %v1370_v11, %v1799_v54 }
 0x103   : > { %v1324_v16 = vpop.f32.mrf.mxu0  ;;  %v1372_v17 = vpop.f32.mrf.mxu1  ;;  %v1044_v19 = vmax.f32 %v1012_v15, 0.0 }
 0x104   : > { %v1325_v20 = vadd.f32 %v1324_v16, %v1323_v12  ;;  %v1373_v21 = vadd.f32 %v1372_v17, %v1371_v13  ;;  %1060 = vst [vmem:[%s1814_s14 + $0x8] sm:$0xff] %v1028_v18  ;;  %v997_v26 = vadd.f32 %v1804_v57, %v958_v22  ;;  %v1013_v27 = vadd.f32 %v1804_v57, %v974_v23 }
 0x105   : > { %v1326_v24 = vpop.f32.mrf.mxu0  ;;  %v1374_v25 = vpop.f32.mrf.mxu1  ;;  %1076 = vst [vmem:[%s1814_s14 + $0x88] sm:$0xff] %v1044_v19 }
 0x106   : > { %v959_v30 = vmul.f32 %v1325_v20, %v1799_v54  ;;  %v975_v31 = vmul.f32 %v1373_v21, %v1799_v54  ;;  %v1029_v34 = vmax.f32 %v997_v26, 0.0  ;;  %v1045_v35 = vmax.f32 %v1013_v27, 0.0 }
 0x107   : > { %v1327_v28 = vpop.f32.mrf.mxu0  ;;  %v1375_v29 = vpop.f32.mrf.mxu1 }
 0x108   : > { %v1328_v32 = vadd.f32 %v1327_v28, %v1326_v24  ;;  %v1376_v33 = vadd.f32 %v1375_v29, %v1374_v25  ;;  %v998_v38 = vadd.f32 %v1804_v57, %v959_v30  ;;  %v1014_v39 = vadd.f32 %v1804_v57, %v975_v31  ;;  %1061 = vst [vmem:[%s1814_s14 + $0x10] sm:$0xff] %v1029_v34 }
 0x109   : > { %v1329_v36 = vpop.f32.mrf.mxu0  ;;  %v1377_v37 = vpop.f32.mrf.mxu1  ;;  %1077 = vst [vmem:[%s1814_s14 + $0x90] sm:$0xff] %v1045_v35 }
 0x10a   : > { %v1030_v42 = vmax.f32 %v998_v38, 0.0  ;;  %v1046_v43 = vmax.f32 %v1014_v39, 0.0  ;;  %v960_v44 = vmul.f32 %v1328_v32, %v1799_v54  ;;  %v976_v45 = vmul.f32 %v1376_v33, %v1799_v54 }
 0x10b   : > { %v1330_v40 = vpop.f32.mrf.mxu0  ;;  %v1378_v41 = vpop.f32.mrf.mxu1 }
 0x10c   : > { %v1331_v46 = vadd.f32 %v1330_v40, %v1329_v36  ;;  %v1379_v47 = vadd.f32 %v1378_v41, %v1377_v37  ;;  %1062 = vst [vmem:[%s1814_s14 + $0x18] sm:$0xff] %v1030_v42  ;;  %1078 = vst [vmem:[%s1814_s14 + $0x98] sm:$0xff] %v1046_v43  ;;  %v999_v50 = vadd.f32 %v1804_v57, %v960_v44 }
 0x10d   : > { %v1332_v48 = vpop.f32.mrf.mxu0  ;;  %v1380_v49 = vpop.f32.mrf.mxu1  ;;  %v1015_v51 = vadd.f32 %v1804_v57, %v976_v45 }
 0x10e   : > { %v1031_v55 = vmax.f32 %v999_v50, 0.0  ;;  %v961_v60 = vmul.f32 %v1331_v46, %v1799_v54  ;;  %v977_v61 = vmul.f32 %v1379_v47, %v1799_v54 }
 0x10f   : > { %v1333_v52 = vpop.f32.mrf.mxu0  ;;  %v1381_v53 = vpop.f32.mrf.mxu1  ;;  %v1047_v56 = vmax.f32 %v1015_v51, 0.0 }
 0x110   : > { %v1334_v58 = vadd.f32 %v1333_v52, %v1332_v48  ;;  %v1382_v59 = vadd.f32 %v1381_v53, %v1380_v49  ;;  %1063 = vst [vmem:[%s1814_s14 + $0x20] sm:$0xff] %v1031_v55  ;;  %v1000_v0 = vadd.f32 %v1804_v57, %v961_v60  ;;  %v1016_v1 = vadd.f32 %v1804_v57, %v977_v61 }
 0x111   : > { %v1335_v62 = vpop.f32.mrf.mxu0  ;;  %v1383_v63 = vpop.f32.mrf.mxu1  ;;  %1079 = vst [vmem:[%s1814_s14 + $0xa0] sm:$0xff] %v1047_v56 }
 0x112   : > { %v962_v4 = vmul.f32 %v1334_v58, %v1799_v54  ;;  %v978_v5 = vmul.f32 %v1382_v59, %v1799_v54  ;;  %v1032_v8 = vmax.f32 %v1000_v0, 0.0  ;;  %v1048_v9 = vmax.f32 %v1016_v1, 0.0 }
 0x113   : > { %v1336_v2 = vpop.f32.mrf.mxu0  ;;  %v1384_v3 = vpop.f32.mrf.mxu1 }
 0x114   : > { %v1337_v6 = vadd.f32 %v1336_v2, %v1335_v62  ;;  %v1385_v7 = vadd.f32 %v1384_v3, %v1383_v63  ;;  %v1001_v12 = vadd.f32 %v1804_v57, %v962_v4  ;;  %v1017_v13 = vadd.f32 %v1804_v57, %v978_v5  ;;  %1064 = vst [vmem:[%s1814_s14 + $0x28] sm:$0xff] %v1032_v8 }
 0x115   : > { %v1338_v10 = vpop.f32.mrf.mxu0  ;;  %v1386_v11 = vpop.f32.mrf.mxu1  ;;  %1080 = vst [vmem:[%s1814_s14 + $0xa8] sm:$0xff] %v1048_v9 }
 0x116   : > { %v1033_v16 = vmax.f32 %v1001_v12, 0.0  ;;  %v1049_v17 = vmax.f32 %v1017_v13, 0.0  ;;  %v963_v18 = vmul.f32 %v1337_v6, %v1799_v54  ;;  %v979_v19 = vmul.f32 %v1385_v7, %v1799_v54 }
 0x117   : > { %v1339_v14 = vpop.f32.mrf.mxu0  ;;  %v1387_v15 = vpop.f32.mrf.mxu1 }
 0x118   : > { %v1340_v20 = vadd.f32 %v1339_v14, %v1338_v10  ;;  %v1388_v21 = vadd.f32 %v1387_v15, %v1386_v11  ;;  %1065 = vst [vmem:[%s1814_s14 + $0x30] sm:$0xff] %v1033_v16  ;;  %1081 = vst [vmem:[%s1814_s14 + $0xb0] sm:$0xff] %v1049_v17  ;;  %v1002_v24 = vadd.f32 %v1804_v57, %v963_v18 }
 0x119   : > { %v1341_v22 = vpop.f32.mrf.mxu0  ;;  %v1389_v23 = vpop.f32.mrf.mxu1  ;;  %v1018_v25 = vadd.f32 %v1804_v57, %v979_v19 }
 0x11a   : > { %v1034_v28 = vmax.f32 %v1002_v24, 0.0  ;;  %v964_v32 = vmul.f32 %v1340_v20, %v1799_v54  ;;  %v980_v33 = vmul.f32 %v1388_v21, %v1799_v54 }
 0x11b   : > { %v1342_v26 = vpop.f32.mrf.mxu0  ;;  %v1390_v27 = vpop.f32.mrf.mxu1  ;;  %v1050_v29 = vmax.f32 %v1018_v25, 0.0 }
 0x11c   : > { %v1343_v30 = vadd.f32 %v1342_v26, %v1341_v22  ;;  %v1391_v31 = vadd.f32 %v1390_v27, %v1389_v23  ;;  %1066 = vst [vmem:[%s1814_s14 + $0x38] sm:$0xff] %v1034_v28  ;;  %v1003_v36 = vadd.f32 %v1804_v57, %v964_v32  ;;  %v1019_v37 = vadd.f32 %v1804_v57, %v980_v33 }
 0x11d   : > { %v1344_v34 = vpop.f32.mrf.mxu0  ;;  %v1392_v35 = vpop.f32.mrf.mxu1  ;;  %1082 = vst [vmem:[%s1814_s14 + $0xb8] sm:$0xff] %v1050_v29 }
 0x11e   : > { %v965_v40 = vmul.f32 %v1343_v30, %v1799_v54  ;;  %v981_v41 = vmul.f32 %v1391_v31, %v1799_v54  ;;  %v1035_v44 = vmax.f32 %v1003_v36, 0.0  ;;  %v1051_v45 = vmax.f32 %v1019_v37, 0.0 }
 0x11f   : > { %v1345_v38 = vpop.f32.mrf.mxu0  ;;  %v1393_v39 = vpop.f32.mrf.mxu1 }
 0x120   : > { %v1346_v42 = vadd.f32 %v1345_v38, %v1344_v34  ;;  %v1394_v43 = vadd.f32 %v1393_v39, %v1392_v35  ;;  %v1004_v48 = vadd.f32 %v1804_v57, %v965_v40  ;;  %v1020_v49 = vadd.f32 %v1804_v57, %v981_v41  ;;  %1067 = vst [vmem:[%s1814_s14 + $0x40] sm:$0xff] %v1035_v44 }
 0x121   : > { %v1347_v46 = vpop.f32.mrf.mxu0  ;;  %v1395_v47 = vpop.f32.mrf.mxu1  ;;  %1083 = vst [vmem:[%s1814_s14 + $0xc0] sm:$0xff] %v1051_v45 }
 0x122   : > { %v1036_v52 = vmax.f32 %v1004_v48, 0.0  ;;  %v1052_v53 = vmax.f32 %v1020_v49, 0.0  ;;  %v966_v55 = vmul.f32 %v1346_v42, %v1799_v54  ;;  %v982_v56 = vmul.f32 %v1394_v43, %v1799_v54 }
 0x123   : > { %v1348_v50 = vpop.f32.mrf.mxu0  ;;  %v1396_v51 = vpop.f32.mrf.mxu1 }
 0x124   : > { %v1349_v58 = vadd.f32 %v1348_v50, %v1347_v46  ;;  %v1397_v59 = vadd.f32 %v1396_v51, %v1395_v47  ;;  %1068 = vst [vmem:[%s1814_s14 + $0x48] sm:$0xff] %v1036_v52  ;;  %1084 = vst [vmem:[%s1814_s14 + $0xc8] sm:$0xff] %v1052_v53  ;;  %v1005_v62 = vadd.f32 %v1804_v57, %v966_v55 }
 0x125   : > { %v1350_v60 = vpop.f32.mrf.mxu0  ;;  %v1398_v61 = vpop.f32.mrf.mxu1  ;;  %v1021_v63 = vadd.f32 %v1804_v57, %v982_v56 }
 0x126   : > { %v1037_v2 = vmax.f32 %v1005_v62, 0.0  ;;  %v967_v6 = vmul.f32 %v1349_v58, %v1799_v54  ;;  %v983_v7 = vmul.f32 %v1397_v59, %v1799_v54 }
 0x127   : > { %v1351_v0 = vpop.f32.mrf.mxu0  ;;  %v1399_v1 = vpop.f32.mrf.mxu1  ;;  %v1053_v3 = vmax.f32 %v1021_v63, 0.0 }
 0x128   : > { %v1352_v4 = vadd.f32 %v1351_v0, %v1350_v60  ;;  %v1400_v5 = vadd.f32 %v1399_v1, %v1398_v61  ;;  %1069 = vst [vmem:[%s1814_s14 + $0x50] sm:$0xff] %v1037_v2  ;;  %v1006_v10 = vadd.f32 %v1804_v57, %v967_v6  ;;  %v1022_v11 = vadd.f32 %v1804_v57, %v983_v7 }
 0x129   : > { %v1353_v8 = vpop.f32.mrf.mxu0  ;;  %v1401_v9 = vpop.f32.mrf.mxu1  ;;  %1085 = vst [vmem:[%s1814_s14 + $0xd0] sm:$0xff] %v1053_v3 }
 0x12a   : > { %v968_v14 = vmul.f32 %v1352_v4, %v1799_v54  ;;  %v984_v15 = vmul.f32 %v1400_v5, %v1799_v54  ;;  %v1038_v18 = vmax.f32 %v1006_v10, 0.0  ;;  %v1054_v19 = vmax.f32 %v1022_v11, 0.0 }
 0x12b   : > { %v1354_v12 = vpop.f32.mrf.mxu0  ;;  %v1402_v13 = vpop.f32.mrf.mxu1 }
 0x12c   : > { %v1355_v16 = vadd.f32 %v1354_v12, %v1353_v8  ;;  %v1403_v17 = vadd.f32 %v1402_v13, %v1401_v9  ;;  %v1007_v22 = vadd.f32 %v1804_v57, %v968_v14  ;;  %v1023_v23 = vadd.f32 %v1804_v57, %v984_v15  ;;  %1070 = vst [vmem:[%s1814_s14 + $0x58] sm:$0xff] %v1038_v18 }
 0x12d   : > { %v1356_v20 = vpop.f32.mrf.mxu0  ;;  %v1404_v21 = vpop.f32.mrf.mxu1  ;;  %1086 = vst [vmem:[%s1814_s14 + $0xd8] sm:$0xff] %v1054_v19 }
 0x12e   : > { %v1039_v26 = vmax.f32 %v1007_v22, 0.0  ;;  %v1055_v27 = vmax.f32 %v1023_v23, 0.0  ;;  %v969_v28 = vmul.f32 %v1355_v16, %v1799_v54  ;;  %v985_v29 = vmul.f32 %v1403_v17, %v1799_v54 }
 0x12f   : > { %v1357_v24 = vpop.f32.mrf.mxu0  ;;  %v1405_v25 = vpop.f32.mrf.mxu1 }
 0x130   : > { %v1358_v30 = vadd.f32 %v1357_v24, %v1356_v20  ;;  %v1406_v31 = vadd.f32 %v1405_v25, %v1404_v21  ;;  %1071 = vst [vmem:[%s1814_s14 + $0x60] sm:$0xff] %v1039_v26  ;;  %1087 = vst [vmem:[%s1814_s14 + $0xe0] sm:$0xff] %v1055_v27  ;;  %v1008_v34 = vadd.f32 %v1804_v57, %v969_v28 }
 0x131   : > { %v1359_v32 = vpop.f32.mrf.mxu0  ;;  %v1407_v33 = vpop.f32.mrf.mxu1  ;;  %v1024_v35 = vadd.f32 %v1804_v57, %v985_v29 }
 0x132   : > { %v1040_v38 = vmax.f32 %v1008_v34, 0.0  ;;  %v970_v42 = vmul.f32 %v1358_v30, %v1799_v54  ;;  %v986_v43 = vmul.f32 %v1406_v31, %v1799_v54 }
 0x133   : > { %v1360_v36 = vpop.f32.mrf.mxu0  ;;  %v1408_v37 = vpop.f32.mrf.mxu1  ;;  %v1056_v39 = vmax.f32 %v1024_v35, 0.0 }
 0x134   : > { %v1361_v40 = vadd.f32 %v1360_v36, %v1359_v32  ;;  %v1409_v41 = vadd.f32 %v1408_v37, %v1407_v33  ;;  %1072 = vst [vmem:[%s1814_s14 + $0x68] sm:$0xff] %v1040_v38  ;;  %v1009_v44 = vadd.f32 %v1804_v57, %v970_v42  ;;  %v1025_v45 = vadd.f32 %v1804_v57, %v986_v43 }
 0x135   : > { %1088 = vst [vmem:[%s1814_s14 + $0xe8] sm:$0xff] %v1056_v39 }
 0x136   : > { %v971_v46 = vmul.f32 %v1361_v40, %v1799_v54  ;;  %v987_v47 = vmul.f32 %v1409_v41, %v1799_v54  ;;  %v1041_v48 = vmax.f32 %v1009_v44, 0.0  ;;  %v1057_v49 = vmax.f32 %v1025_v45, 0.0 }
 0x138   : > { %v1010_v50 = vadd.f32 %v1804_v57, %v971_v46  ;;  %v1026_v51 = vadd.f32 %v1804_v57, %v987_v47  ;;  %1073 = vst [vmem:[%s1814_s14 + $0x70] sm:$0xff] %v1041_v48  ;;  %1089 = vst [vmem:[%s1814_s14 + $0xf0] sm:$0xff] %v1057_v49 }
 0x13a   : > { %v1042_v54 = vmax.f32 %v1010_v50, 0.0  ;;  %v1058_v52 = vmax.f32 %v1026_v51, 0.0 }
 0x13c   : > { %1074 = vst [vmem:[%s1814_s14 + $0x78] sm:$0xff] %v1042_v54  ;;  %1090 = vst [vmem:[%s1814_s14 + $0xf8] sm:$0xff] %v1058_v52 }
 0x13d   : > { %1561 = shalt.err (!%p1558_p5)
}
 0x13e   : > { %s1562_s9 = scalar_lea.hbm %s1909_s29, 4096  ;;  %s1566_s5 = scalar_lea.hbm %s1966_s4, 32768 }
 0x13f   : > { %p1563_p6 = scmp.ne.s32.totalorder %s1909_s29, %s1562_s9  ;;  %p1567_p10 = scmp.lt.s32.totalorder %s1909_s29, %s1966_s4 }
 0x140   : > { %p1568_p11 = scmp.lt.s32.totalorder %s1566_s5, %s1562_s9 }
 0x141   : > { %p1564_p7 = pnand %p1563_p6, %p1694_p4 }
 0x142   : > { %p1569_p12 = por %p1568_p11, %p1567_p10 }
 0x143   : > { %p1565_p9 = pneg %p1564_p7 }
 0x145   : > { %p1570_p13 = pnand %p1569_p12, %p1565_p9 }
 0x147   : > { %1573 = shalt.err (!%p1570_p13)
}
 0x148   : > { %s1627_s14 = smov 128   ;;  %s1628_s21 = smov 8  }
 0x149   : > { %1426 = dma.vmem_to_hbm [thread:$0]  (%p1694_p4), %s1911_s22, 4096, %s1909_s29, %s1917_s18, %s1627_s14, %s1627_s14, %s1628_s21  }
 0x14a PF: > { %p1432_p0 = scmp.ge.s32.totalorder %s1624_s20, 2  ;;  %s1121_s24 = sand.u32 1, %s1604_s15  }
 0x14b   : > { %s1122_s26 = scalar_lea.sflag [#allocation3], %s1121_s24 }
 0x14c   : > { %p1429_p1 = pnand %p1432_p0, %p1701_p8 }
 0x14e   : > { %p1430_p2 = pneg %p1429_p1 }
 0x150   : > { %1599 = dma.done.wait (%p1430_p2), %s1122_s26, 4096  }
 0x151   : > { %1601 = vsyncadd (%p1430_p2), %s1122_s26, 4294963200  ;;  %s17_s20 = sadd.s32 1, %s1624_s20   ;;  %s1969_s15 = smov %s1608_s16 }
 0x152   : > { %p14_p3 = scmp.ge.s32.totalorder %s17_s20, 10   ;;  %s1970_s16 = smov %s1612_s17 }
 0x153   : > { %s1971_s17 = smov %s1707_s28  ;;  %s1972_s18 = smov %s1620_s19 }
 0x154   : > { %s1973_s19 = smov %s1975_s23  ;;  %16 = sbr.rel (!%p14_p3) target bundleno = 4 (0x4), region = 88 }
 0x159   :  { %1127 = vsyncpa [#allocation3], 1 }
 0x15a   :  { %1129 = vsyncpa [#allocation3 + $0x1], 1 }

</bundles_post_ra>
